<compile_context>
chip_gen: v7x
topology: tpu7x:2x2x1
jax: 0.10.0
libtpu: 0.0.40
codegen_flags: <defaults>
</compile_context>

<pallas_src>
import functools

import jax
import jax.numpy as jnp
from jax import lax
from jax.experimental import pallas as pl
from jax.experimental.pallas import tpu as pltpu


def _round_up(v, m):
    return ((v + m - 1) // m) * m


def _cdiv(a, b):
    return -(-a // b)


def _dwconv_kernel(x_ref, head_ref, w_ref, b_ref, o_ref, *, k_taps, t_tile):
    # x_ref:    (R_tile, T_tile)   main input: x_pad[:, t*T_tile + Hw : ... + T_tile]
    # head_ref: (1, R_tile, Hw)    halo:       x_pad[:, t*T_tile : t*T_tile + Hw]
    # w_ref:    (R_tile, K)        per-row depthwise taps
    # b_ref:    (R_tile, 1)        per-row bias
    # o_ref:    (R_tile, T_tile)   (clipped to T_out at the array edge)
    #
    # x_aug[:, m] == x_pad[:, t*T_tile + m]
    x_aug = jnp.concatenate([head_ref[0], x_ref[...]], axis=-1).astype(jnp.float32)
    w = w_ref[...].astype(jnp.float32)
    b = b_ref[...].astype(jnp.float32)

    # K is small & static -> unrolled shifted multiply-adds on the VPU.
    # Accumulator starts from tap 0 + bias (saves a zeros tile + final add).
    acc = x_aug[:, 0:t_tile] * w[:, 0:1] + b
    for k in range(1, k_taps):
        acc = acc + x_aug[:, k:k + t_tile] * w[:, k:k + 1]

    o_ref[...] = acc.astype(o_ref.dtype)


@functools.partial(jax.jit, static_argnames=("padding",))
def depthwise_conv1d(x, weight, bias, padding):
    """x: (B, C, T); weight: (C, 1, K); bias: (C,); padding: (left, right)."""
    B, C, T = x.shape
    K = weight.shape[-1]
    pad_l, pad_r = padding
    T_out = T + pad_l + pad_r - K + 1
    assert T_out >= 1, "output length must be positive"

    rows = B * C
    x2 = x.reshape(rows, T)                      # free reshape (contiguous)
    Hw = max(K - 1, 1)                           # halo width per time tile

    # ---- tile sizes --------------------------------------------------------
    # Lane-dense time tiles (multiple of 128, up to 1024) amortize the
    # ~0.35us/step overhead and keep DMAs long; Pallas clips the edges.
    T_tile = min(1024, _round_up(T_out, 128))
    nt = _cdiv(T_out, T_tile)
    # Fixed row (sublane) tile; edge blocks are clipped (no divisor search).
    R_tile = min(256, _round_up(rows, 8))
    nr = _cdiv(rows, R_tile)
    assert Hw <= T_tile

    # ---- main input --------------------------------------------------------
    # Kernel expects x_main[:, m] == x_pad[:, m + Hw] == x2[:, m + Hw - pad_l].
    s = Hw - pad_l
    if s == 0 and T_out <= T:
        # Causal default (pad_l == K-1, pad_r == 0): feed x2 directly, zero
        # extra HBM traffic.  Clipped ragged lanes only reach masked outputs.
        x_main = x2
    else:
        # General path: one minimal pad/slice of width T_out.
        W = T_out
        left = max(0, -s)
        start = max(0, s)
        avail = max(0, min(T - start, W - left))
        right = W - left - avail
        x_main = jnp.pad(x2[:, start:start + avail], ((0, 0), (left, right)))

    # ---- halo (heads) ------------------------------------------------------
    # heads[t, :, j] == x_pad[:, t*T_tile + j],  j < Hw.  Built with
    # pad + reshape + static slice (fuses; tiny (nt, rows, Hw) output).
    total = nt * T_tile
    x_padh = jnp.pad(x2, ((0, 0), (pad_l, max(0, total - (pad_l + T)))))
    heads = x_padh[:, :total].reshape(rows, nt, T_tile)[:, :, :Hw]
    heads = jnp.transpose(heads, (1, 0, 2))                     # (nt, rows, Hw)

    # Per-row weights / bias (rows = B*C packs batch+channel on sublanes).
    w_rows = jnp.tile(weight.reshape(C, K), (B, 1))              # (rows, K)
    b_rows = jnp.tile(bias.reshape(C, 1), (B, 1))                # (rows, 1)

    kernel = functools.partial(_dwconv_kernel, k_taps=K, t_tile=T_tile)

    # Scoped-VMEM budget from the actual tile math; capped at 48 MiB so it is
    # safe on v7x (64 MiB physical) while still generous on v5e/v6e.
    itemsize = jnp.dtype(x.dtype).itemsize
    est = (4 * R_tile * T_tile * itemsize            # double-buffered in + out
           + 2 * R_tile * (T_tile + Hw) * 4          # f32 x_aug + accumulator
           + 8 * R_tile * (K + 1 + Hw) * itemsize)   # weights / bias / halo
    vmem_limit = int(min(48 * 2**20, max(16 * 2**20, 4 * est)))

    out = pl.pallas_call(
        kernel,
        out_shape=jax.ShapeDtypeStruct((rows, T_out), x.dtype),
        grid_spec=pltpu.PrefetchScalarGridSpec(
            num_scalar_prefetch=0,
            grid=(nr, nt),                      # t innermost: w/b not re-DMA'd
            in_specs=[
                pl.BlockSpec((R_tile, T_tile), lambda r, t: (r, t)),
                pl.BlockSpec((1, R_tile, Hw), lambda r, t: (t, r, 0)),
                pl.BlockSpec((R_tile, K), lambda r, t: (r, 0)),
                pl.BlockSpec((R_tile, 1), lambda r, t: (r, 0)),
            ],
            out_specs=pl.BlockSpec((R_tile, T_tile), lambda r, t: (r, t)),
        ),
        compiler_params=pltpu.CompilerParams(
            dimension_semantics=("parallel", "parallel"),
            vmem_limit_bytes=vmem_limit),
    )(x_main, heads, w_rows, b_rows)

    return out.reshape(B, C, T_out)


def _reference(x, weight, bias, padding):
    # Pure-JAX reference: grouped (depthwise) conv via lax.
    C = x.shape[1]
    x_pad = jnp.pad(x, ((0, 0), (0, 0), (padding[0], padding[1])))
    return lax.conv_general_dilated(
        x_pad, weight, window_strides=(1,), padding="VALID",
        dimension_numbers=("NCH", "OIH", "NCH"),
        feature_group_count=C) + bias[None, :, None]


def _check(B, C, T, K, padding, seed):
    key = jax.random.PRNGKey(seed)
    kx, kw, kb = jax.random.split(key, 3)
    x = jax.random.normal(kx, (B, C, T), dtype=jnp.float32)
    bound = 1.0 / (K ** 0.5)
    weight = jax.random.uniform(kw, (C, 1, K), jnp.float32, -bound, bound)
    bias = jax.random.uniform(kb, (C,), jnp.float32, -bound, bound)

    y = jax.block_until_ready(depthwise_conv1d(x, weight, bias, padding=padding))
    y_ref = _reference(x, weight, bias, padding)
    assert y.shape == (B, C, T + padding[0] + padding[1] - K + 1)
    assert jnp.allclose(y, y_ref, atol=2e-5, rtol=1e-5), \
        f"mismatch: max abs err {jnp.max(jnp.abs(y - y_ref))}"


if __name__ == "__main__":
    # Primary small case consistent with the module (depthwise: chan_in == chan_out),
    # causal padding (SoundStorm default) -> copy-free fast path.
    _check(2, 4, 16, 3, padding=(2, 0), seed=0)
    # "same" padding path (pad_r > 0) -> general fallback path.
    _check(2, 4, 16, 3, padding=(1, 1), seed=1)
    # Multi time-tile + clipped row/lane edge blocks + halo from real data.
    _check(3, 5, 1500, 3, padding=(2, 0), seed=2)
    # Larger kernel width, single tile.
    _check(2, 8, 600, 5, padding=(4, 0), seed=3)
    print("KERNEL_OK")
</pallas_src>

<mosaic_0001>
module attributes {stable_mosaic.version = 11 : i64} {
  func.func @_dwconv_kernel(%arg0: i32, %arg1: i32, %arg2: memref<8x128xf32, #tpu.memory_space<vmem>>, %arg3: memref<1x8x2xf32, #tpu.memory_space<vmem>>, %arg4: memref<8x3xf32, #tpu.memory_space<vmem>>, %arg5: memref<8x1xf32, #tpu.memory_space<vmem>>, %arg6: memref<8x128xf32, #tpu.memory_space<vmem>>) attributes {dimension_semantics = [#tpu.dimension_semantics<parallel>, #tpu.dimension_semantics<parallel>], iteration_bounds = array<i64: 1, 1>, scalar_prefetch = 0 : i64, scratch_operands = 0 : i64, tpu.core_type = #tpu.core_type<tc>, window_params = [{transform_indices = @transform_0, window_bounds = array<i64: 8, 128>}, {transform_indices = @transform_1, window_bounds = array<i64: 1, 8, 2>}, {transform_indices = @transform_2, window_bounds = array<i64: 8, 3>}, {transform_indices = @transform_3, window_bounds = array<i64: 8, 1>}, {transform_indices = @transform_4, window_bounds = array<i64: 8, 128>}]} {
    %c0 = arith.constant 0 : index
    %c0_0 = arith.constant 0 : index
    %c0_1 = arith.constant 0 : index
    %0 = vector.load %arg3[%c0, %c0_0, %c0_1] : memref<1x8x2xf32, #tpu.memory_space<vmem>>, vector<1x8x2xf32>
    %1 = vector.shape_cast %0 : vector<1x8x2xf32> to vector<8x2xf32>
    %c0_2 = arith.constant 0 : index
    %c0_3 = arith.constant 0 : index
    %2 = vector.load %arg2[%c0_2, %c0_3] : memref<8x128xf32, #tpu.memory_space<vmem>>, vector<8x128xf32>
    %3 = tpu.concatenate %1, %2 in 1 : vector<8x2xf32>, vector<8x128xf32> -> vector<8x130xf32>
    %c0_4 = arith.constant 0 : index
    %c0_5 = arith.constant 0 : index
    %4 = vector.load %arg4[%c0_4, %c0_5] : memref<8x3xf32, #tpu.memory_space<vmem>>, vector<8x3xf32>
    %c0_6 = arith.constant 0 : index
    %c0_7 = arith.constant 0 : index
    %5 = vector.load %arg5[%c0_6, %c0_7] : memref<8x1xf32, #tpu.memory_space<vmem>>, vector<8x1xf32>
    %6 = vector.extract_strided_slice %3 {offsets = [0, 0], sizes = [8, 128], strides = [1, 1]} : vector<8x130xf32> to vector<8x128xf32>
    %7 = vector.extract_strided_slice %4 {offsets = [0, 0], sizes = [8, 1], strides = [1, 1]} : vector<8x3xf32> to vector<8x1xf32>
    %8 = vector.broadcast %7 : vector<8x1xf32> to vector<8x128xf32>
    %9 = arith.mulf %6, %8 : vector<8x128xf32>
    %10 = vector.broadcast %5 : vector<8x1xf32> to vector<8x128xf32>
    %11 = arith.addf %9, %10 : vector<8x128xf32>
    %12 = vector.extract_strided_slice %3 {offsets = [0, 1], sizes = [8, 128], strides = [1, 1]} : vector<8x130xf32> to vector<8x128xf32>
    %13 = vector.extract_strided_slice %4 {offsets = [0, 1], sizes = [8, 1], strides = [1, 1]} : vector<8x3xf32> to vector<8x1xf32>
    %14 = vector.broadcast %13 : vector<8x1xf32> to vector<8x128xf32>
    %15 = arith.mulf %12, %14 : vector<8x128xf32>
    %16 = arith.addf %11, %15 : vector<8x128xf32>
    %17 = vector.extract_strided_slice %3 {offsets = [0, 2], sizes = [8, 128], strides = [1, 1]} : vector<8x130xf32> to vector<8x128xf32>
    %18 = vector.extract_strided_slice %4 {offsets = [0, 2], sizes = [8, 1], strides = [1, 1]} : vector<8x3xf32> to vector<8x1xf32>
    %19 = vector.broadcast %18 : vector<8x1xf32> to vector<8x128xf32>
    %20 = arith.mulf %17, %19 : vector<8x128xf32>
    %21 = arith.addf %16, %20 : vector<8x128xf32>
    %c0_8 = arith.constant 0 : index
    %c0_9 = arith.constant 0 : index
    %22 = vector.load %arg6[%c0_8, %c0_9] : memref<8x128xf32, #tpu.memory_space<vmem>>, vector<8x128xf32>
    tpu.vector_store %arg6[%c0_8, %c0_9], %21 {strides = array<i32>} : memref<8x128xf32, #tpu.memory_space<vmem>>, vector<8x128xf32>,
    return
  }
  func.func @transform_0(%arg0: i32, %arg1: i32) -> (i32, i32) {
    %c0_i32 = arith.constant 0 : i32
    return %arg0, %arg1 : i32, i32
  }
  func.func @transform_1(%arg0: i32, %arg1: i32) -> (i32, i32, i32) {
    %c0_i32 = arith.constant 0 : i32
    %c0_i32_0 = arith.constant 0 : i32
    return %arg1, %arg0, %c0_i32 : i32, i32, i32
  }
  func.func @transform_2(%arg0: i32, %arg1: i32) -> (i32, i32) {
    %c0_i32 = arith.constant 0 : i32
    %c0_i32_0 = arith.constant 0 : i32
    return %arg0, %c0_i32 : i32, i32
  }
  func.func @transform_3(%arg0: i32, %arg1: i32) -> (i32, i32) {
    %c0_i32 = arith.constant 0 : i32
    %c0_i32_0 = arith.constant 0 : i32
    return %arg0, %c0_i32 : i32, i32
  }
  func.func @transform_4(%arg0: i32, %arg1: i32) -> (i32, i32) {
    %c0_i32 = arith.constant 0 : i32
    return %arg0, %arg1 : i32, i32
  }
}

</mosaic_0001>

<bundles_post_ra>
// kernel: depthwise_conv1d.1
= control target key start
LH: loop header
LB: loop body
LE: loop exit
PB: predicated region body
PF: predicated region fallthrough
CT: control target
= control target key end

     0   :  { %v121_v2 = vmov 1   ;;  %s122_s19 = smov 2   ;;  %s177_s0 = inlined_call_operand.vmem [shape: f32[8,16], index: 0, kind: input, shape index: {}]   ;;  %s178_s1 = inlined_call_operand.vmem [shape: f32[1,8,2], index: 1, kind: input, shape index: {}]   ;;  %s179_s2 = inlined_call_operand.vmem [shape: f32[8,3], index: 2, kind: input, shape index: {}]   ;;  %s180_s3 = inlined_call_operand.vmem [shape: f32[8,1], index: 3, kind: input, shape index: {}]   ;;  %s181_s4 = inlined_call_operand.hbm [shape: f32[8,16], index: 4, kind: output, shape index: {}]  }
   0x1   :  { %v19_v0 = vld [vmem:[%s177_s0] sm:$0xff]  ;;  %94 = vset.pattern.permute.xlu0 %v121_v2 }
   0x2   :  { %v26_v1 = vld [vmem:[%s179_s2] sm:$0xff]  ;;  %21 = vrot.lane.b32.xlu1 %v19_v0, %s122_s19 }
   0x3   :  { %9 = vsyncpa [#allocation3], 0  ;;  %41 = vperm.xlu0 %94, %v26_v1   ;;  %v123_v3 = vmov 0   ;;  %v124_v4 = vmov 2   ;;  %v27_v5 = vld [vmem:[%s180_s3] sm:$0xff]  ;;  %vm24_vm0 = vcmask 15360  }
   0x4   :  { %96 = vset.pattern.permute.xlu1 %v123_v3  ;;  %v18_v7 = vld [vmem:[%s178_s1] sm:$0xff]  ;;  %s125_s22 = smov 127   ;;  %s126_s23 = smov 126   ;;  %vm52_vm1 = vcmask 1039360   ;;  %vm68_vm2 = vcmask 1031168  }
   0x5   :  { %s127_s1 = smov [#allocation2]  }
   0x6   :  { %30 = vperm.xlu1 %96, %v26_v1   ;;  %s79_s3 = sshll.u32 %s127_s1, 4  ;;  %s80_s3 = int_to_ptr.vmem [resolvable:$true] %s79_s3 }
   0x7   :  { %95 = vset.pattern.permute.xlu0 %v124_v4  ;;  %s97_s24 = scalar_lea.vmem %s80_s3, 128  ;;  %p102_p1 = scmp.lt.s32.totalorder %s80_s3, %s80_s3 }
   0x8   :  { %57 = vperm.xlu0 %95, %v26_v1   ;;  %p98_p0 = scmp.ne.s32.totalorder %s80_s3, %s97_s24  ;;  %p103_p2 = scmp.lt.s32.totalorder %s97_s24, %s97_s24 }
   0xa   :  { %36 = vperm.xlu1 %96, %v27_v5   ;;  %p104_p3 = por %p103_p2, %p102_p1 }
   0xc   :  { %p105_p4 = pnand %p104_p3, %p98_p0 }
  0x74   :  { %v22_v6 = vpop.permute.xlu1 %21 }
  0x75   :  { %v25_v8 = vsel %vm24_vm0, %v18_v7, %v22_v6 }
  0x82   :  { %v42_v9 = vpop.permute.xlu0 %41 }
  0x83   :  { %v44_v10 = vmul.f32 %v42_v9, %v25_v8  ;;  %v45_v11 = vmul.f32 %v42_v9, %v22_v6 }
  0x85   :  { %50 = vrot.lane.b32.xlu1 %v45_v11, %s125_s22  ;;  %48 = vrot.lane.b32.xlu0 %v44_v10, %s125_s22  ;;  %v31_v15 = vpop.permute.xlu1 %30 }
  0x86   :  { %v33_v19 = vmul.f32 %v31_v15, %v25_v8 }
  0x87   :  { %v58_v12 = vpop.permute.xlu0 %57 }
  0x88   :  { %v60_v13 = vmul.f32 %v58_v12, %v25_v8  ;;  %v61_v14 = vmul.f32 %v58_v12, %v22_v6 }
  0x89   :  { %v37_v16 = vpop.permute.xlu1 %36 }
  0x8a   :  { %66 = vrot.lane.b32.xlu1 %v61_v14, %s126_s23  ;;  %64 = vrot.lane.b32.xlu0 %v60_v13, %s126_s23  ;;  %v39_v21 = vadd.f32 %v37_v16, %v33_v19 }
  0xf7   :  { %v51_v17 = vpop.permute.xlu1 %50  ;;  %v49_v18 = vpop.permute.xlu0 %48 }
  0xf8   :  { %v53_v20 = vsel %vm52_vm1, %v49_v18, %v51_v17 }
  0xf9   :  { %v55_v22 = vadd.f32 %v53_v20, %v39_v21 }
  0xfc   :  { %v67_v23 = vpop.permute.xlu1 %66  ;;  %v65_v24 = vpop.permute.xlu0 %64 }
  0xfd   :  { %v69_v25 = vsel %vm68_vm2, %v65_v24, %v67_v23 }
  0xfe   :  { %v71_v26 = vadd.f32 %v69_v25, %v55_v22 }
 0x100   :  { %72 = vst [vmem:[#allocation2] sm:$0xff] %v71_v26 }
 0x101   :  { %108 = shalt.err (!%p105_p4)
}
 0x102   :  { %s109_s27 = scalar_lea.hbm %s181_s4, 128 }
 0x103   :  { %p110_p5 = scmp.ne.s32.totalorder %s181_s4, %s109_s27  ;;  %p113_p6 = scmp.lt.u32.totalorder %s109_s27, %s181_s4 }
 0x105   :  { %p115_p7 = pnand %p113_p6, %p110_p5 }
 0x107   :  { %118 = shalt.err (!%p115_p7)
}
 0x108   :  { %82 = dma.vmem_to_hbm [thread:$0]  %s80_s3, 128, %s181_s4, [#allocation3]  }
 0x109   :  { %119 = dma.done.wait [#allocation3], 128  }
 0x10a   :  { %120 = vsyncadd [#allocation3], 4294967168 }
 0x10b   :  { %86 = vsyncpa [#allocation3], 1 }

</bundles_post_ra>
